<compile_context>
chip_gen: v7x
topology: tpu7x:2x2x1
jax: 0.10.0
libtpu: 0.0.40
codegen_flags: <defaults>
</compile_context>

<pallas_src>
import jax
import jax.numpy as jnp
from jax import lax
from jax.experimental import pallas as pl
from jax.experimental.pallas import tpu as pltpu

LEAKY_SLOPE = 0.2
BN_EPS = 0.8  # nn.BatchNorm2d(out_filters, 0.8): second positional arg is eps


def _round_up(x, m):
    return (x + m - 1) // m * m


# ---------------------------------------------------------------------------
# Pallas kernels
# ---------------------------------------------------------------------------
def _conv_fused_kernel(p_ref, w_ref, b_ref, scale_ref, shift_ref, o_ref):
    # (TM, Kp) @ (Kp, Coutp): bf16 operands, f32 accumulation on the MXU.
    y = jnp.dot(p_ref[...], w_ref[...], preferred_element_type=jnp.float32)
    y = y + b_ref[...]                                   # conv bias (pre-activation)
    y = jnp.where(y > 0, y, LEAKY_SLOPE * y)             # LeakyReLU(0.2)
    o_ref[...] = y * scale_ref[...] + shift_ref[...]     # folded inference BatchNorm


def _linear_kernel(x_ref, w_ref, b_ref, o_ref, acc_ref):
    k = pl.program_id(1)

    @pl.when(k == 0)
    def _():
        acc_ref[...] = jnp.zeros_like(acc_ref)

    acc_ref[...] += jnp.dot(x_ref[...], w_ref[...], preferred_element_type=jnp.float32)

    @pl.when(k == pl.num_programs(1) - 1)
    def _():
        o_ref[...] = acc_ref[...] + b_ref[...]


# ---------------------------------------------------------------------------
# pallas_call wrappers
# ---------------------------------------------------------------------------
def _vmem_limit_bytes(single_buffer_bytes):
    # Double-buffered estimate + margin; clamp to a range safe for v7x's 64 MiB VMEM
    # while leaving pipeline headroom on v5e/v6e.
    est = 2 * int(single_buffer_bytes) + (2 << 20)
    return max(16 << 20, min(est, 48 << 20))


def _fused_conv_matmul(patches, w, b, scale, shift):
    """patches (M, Kp) bf16; w (Kp, Coutp) bf16; b/scale/shift (1, Coutp) f32.
    Returns (M, Coutp) f32 after LeakyReLU + folded-BN epilogue."""
    m, kp = patches.shape
    cout_p = w.shape[1]
    tm = min(512, _round_up(m, 16))          # row tile (>=16 for bf16 sublane packing)
    mp = _round_up(m, tm)
    if mp != m:
        patches = jnp.pad(patches, ((0, mp - m), (0, 0)))

    buf = tm * kp * 2 + kp * cout_p * 2 + 3 * cout_p * 4 + tm * cout_p * 4
    out = pl.pallas_call(
        _conv_fused_kernel,
        grid=(mp // tm,),
        in_specs=[
            pl.BlockSpec((tm, kp), lambda i: (i, 0)),        # patch rows stream over M
            pl.BlockSpec((kp, cout_p), lambda i: (0, 0)),    # weights resident
            pl.BlockSpec((1, cout_p), lambda i: (0, 0)),     # bias resident
            pl.BlockSpec((1, cout_p), lambda i: (0, 0)),     # BN scale resident
            pl.BlockSpec((1, cout_p), lambda i: (0, 0)),     # BN shift resident
        ],
        out_specs=pl.BlockSpec((tm, cout_p), lambda i: (i, 0)),
        out_shape=jax.ShapeDtypeStruct((mp, cout_p), jnp.float32),
        compiler_params=pltpu.CompilerParams(
            dimension_semantics=("parallel",),
            vmem_limit_bytes=_vmem_limit_bytes(buf),
        ),
    )(patches, w, b, scale, shift)
    return out[:m]


def _linear_pallas(x_flat, w, b):
    """x_flat (batch, feat) f32; w (feat_p, Lp) bf16; b (1, Lp) f32 -> (batch, Lp) f32."""
    batch, feat = x_flat.shape
    feat_p, lp = w.shape
    x = x_flat.astype(jnp.bfloat16)
    tm = 256 if batch >= 256 else _round_up(batch, 16)
    mp = _round_up(batch, tm)
    x = jnp.pad(x, ((0, mp - batch), (0, feat_p - feat)))

    tk = 512 if feat_p % 512 == 0 else (256 if feat_p % 256 == 0 else 128)
    grid = (mp // tm, feat_p // tk)
    buf = tm * tk * 2 + tk * lp * 2 + lp * 4 + 2 * tm * lp * 4
    out = pl.pallas_call(
        _linear_kernel,
        grid=grid,
        in_specs=[
            pl.BlockSpec((tm, tk), lambda i, k: (i, k)),
            pl.BlockSpec((tk, lp), lambda i, k: (k, 0)),
            pl.BlockSpec((1, lp), lambda i, k: (0, 0)),
        ],
        out_specs=pl.BlockSpec((tm, lp), lambda i, k: (i, 0)),
        out_shape=jax.ShapeDtypeStruct((mp, lp), jnp.float32),
        scratch_shapes=[pltpu.VMEM((tm, lp), jnp.float32)],
        compiler_params=pltpu.CompilerParams(
            dimension_semantics=("parallel", "arbitrary"),
            vmem_limit_bytes=_vmem_limit_bytes(buf),
        ),
    )(x, w, b)
    return out[:batch]


# ---------------------------------------------------------------------------
# Glue: im2col for Conv2d(k=3, stride=2, pad=1), NHWC
# ---------------------------------------------------------------------------
def _im2col(x):
    # x: (N, H, W, C) -> patches (N*Ho*Wo, 9*C), tap-major / channel-minor
    n, h, w, c = x.shape
    ho, wo = h // 2, w // 2
    xp = jnp.pad(x, ((0, 0), (1, 1), (1, 1), (0, 0)))
    taps = []
    for dy in range(3):
        for dx in range(3):
            taps.append(xp[:, dy : dy + 2 * ho : 2, dx : dx + 2 * wo : 2, :])
    patches = jnp.stack(taps, axis=3)  # (N, Ho, Wo, 9, C)
    return patches.reshape(n * ho * wo, 9 * c), (n, ho, wo)


def _conv_block(x, p):
    patches, (n, ho, wo) = _im2col(x.astype(jnp.bfloat16))
    kp = p["w"].shape[0]
    k = patches.shape[1]
    if kp != k:  # pad contraction dim to match the padded weight rows (zeros)
        patches = jnp.pad(patches, ((0, 0), (0, kp - k)))
    y = _fused_conv_matmul(patches, p["w"], p["b"], p["scale"], p["shift"])
    return y[:, : p["cout"]].reshape(n, ho, wo, p["cout"])


# ---------------------------------------------------------------------------
# Parameter init (PyTorch-convention, synthetic) + preparation (fold/pad/cast)
# ---------------------------------------------------------------------------
def init_encoder_params(key, channels, scale, img_size, latent_dim):
    chans = [channels, 4 * scale, 8 * scale, 16 * scale, 32 * scale]
    conv_params = []
    for i in range(4):
        cin, cout = chans[i], chans[i + 1]
        key, k1, k2, k3, k4, k5, k6 = jax.random.split(key, 7)
        p = {
            "w": 0.05 * jax.random.normal(k1, (9 * cin, cout), jnp.float32),
            "b": 0.05 * jax.random.normal(k2, (1, cout), jnp.float32),
        }
        if i > 0:  # bn=True for blocks 2..4
            p.update(
                gamma=1.0 + 0.1 * jax.random.normal(k3, (1, cout), jnp.float32),
                beta=0.1 * jax.random.normal(k4, (1, cout), jnp.float32),
                mean=0.1 * jax.random.normal(k5, (1, cout), jnp.float32),
                var=1.0 + 0.1 * jnp.abs(jax.random.normal(k6, (1, cout), jnp.float32)),
            )
        conv_params.append(p)
    ds = img_size // 2 ** 4
    feat = 32 * scale * ds * ds
    key, k1, k2 = jax.random.split(key, 3)
    lin_params = {
        # rows in PyTorch NCHW-flatten order: index = c*ds*ds + h*ds + w
        "w": 0.05 * jax.random.normal(k1, (feat, latent_dim), jnp.float32),
        "b": 0.05 * jax.random.normal(k2, (1, latent_dim), jnp.float32),
    }
    return conv_params, lin_params


def prepare_encoder_params(conv_raw, lin_raw, channels, scale, img_size, latent_dim):
    """One-time folding / padding / layout prep (done outside the per-forward path)."""
    chans = [channels, 4 * scale, 8 * scale, 16 * scale, 32 * scale]
    conv_prepared = []
    for i, p in enumerate(conv_raw):
        cin, cout = chans[i], chans[i + 1]
        kp = _round_up(9 * cin, 16)          # bf16 sublane-aligned contraction dim
        cout_p = _round_up(cout, 128)        # lane-dense output channels
        w = jnp.pad(p["w"], ((0, kp - 9 * cin), (0, cout_p - cout))).astype(jnp.bfloat16)
        b = jnp.pad(p["b"], ((0, 0), (0, cout_p - cout)))
        if "gamma" in p:
            # Fold inference BN (applied AFTER LeakyReLU) into per-channel scale/shift.
            s = p["gamma"] * lax.rsqrt(p["var"] + BN_EPS)
            sh = p["beta"] - p["mean"] * s
        else:
            s = jnp.ones((1, cout), jnp.float32)
            sh = jnp.zeros((1, cout), jnp.float32)
        conv_prepared.append(
            dict(
                w=w,
                b=b,
                scale=jnp.pad(s, ((0, 0), (0, cout_p - cout))),
                shift=jnp.pad(sh, ((0, 0), (0, cout_p - cout))),
                cout=cout,
            )
        )

    # Linear: permute rows from NCHW-flatten (PyTorch view) order to NHWC-flatten order,
    # so the forward can flatten the NHWC activations directly (no per-forward transpose).
    ds = img_size // 2 ** 4
    c_last = 32 * scale
    feat = c_last * ds * ds
    w_nhwc = (
        lin_raw["w"]
        .reshape(c_last, ds, ds, latent_dim)
        .transpose(1, 2, 0, 3)
        .reshape(feat, latent_dim)
    )
    feat_p = _round_up(feat, 128)
    lp = _round_up(latent_dim, 128)
    w_lin = jnp.pad(w_nhwc, ((0, feat_p - feat), (0, lp - latent_dim))).astype(jnp.bfloat16)
    b_lin = jnp.pad(lin_raw["b"], ((0, 0), (0, lp - latent_dim)))
    lin_prepared = dict(w=w_lin, b=b_lin, latent=latent_dim)
    return conv_prepared, lin_prepared


# ---------------------------------------------------------------------------
# Forward pass
# ---------------------------------------------------------------------------
def encoder_forward(img_nchw, conv_prepared, lin_prepared):
    x = jnp.transpose(img_nchw, (0, 2, 3, 1))  # NCHW -> NHWC (only layout transpose)
    for p in conv_prepared:
        x = _conv_block(x, p)
    n = x.shape[0]
    x_flat = x.reshape(n, -1)  # NHWC flatten; linear weight pre-permuted to match
    y = _linear_pallas(x_flat, lin_prepared["w"], lin_prepared["b"])
    return y[:, : lin_prepared["latent"]]


if __name__ == "__main__":
    # Small shapes consistent with the module: img_size must be divisible by 16.
    batch, channels, img_size = 2, 4, 16
    encoder_scale, latent_dim = 4, 32

    key = jax.random.PRNGKey(0)
    key, pkey, xkey = jax.random.split(key, 3)
    conv_raw, lin_raw = init_encoder_params(
        pkey, channels, encoder_scale, img_size, latent_dim
    )
    conv_prepared, lin_prepared = prepare_encoder_params(
        conv_raw, lin_raw, channels, encoder_scale, img_size, latent_dim
    )
    img = jax.random.normal(xkey, (batch, channels, img_size, img_size), jnp.float32)

    fwd = jax.jit(lambda x: encoder_forward(x, conv_prepared, lin_prepared))
    validity = fwd(img)
    jax.block_until_ready(validity)
    assert validity.shape == (batch, latent_dim), validity.shape
    assert bool(jnp.all(jnp.isfinite(validity)))
    print("KERNEL_OK")
</pallas_src>

<mosaic_0001>
module attributes {stable_mosaic.version = 11 : i64} {
  func.func @_conv_fused_kernel(%arg0: i32, %arg1: memref<128x48xbf16, #tpu.memory_space<vmem>>, %arg2: memref<48x128xbf16, #tpu.memory_space<vmem>>, %arg3: memref<1x128xf32, #tpu.memory_space<vmem>>, %arg4: memref<1x128xf32, #tpu.memory_space<vmem>>, %arg5: memref<1x128xf32, #tpu.memory_space<vmem>>, %arg6: memref<128x128xf32, #tpu.memory_space<vmem>>) attributes {dimension_semantics = [#tpu.dimension_semantics<parallel>], iteration_bounds = array<i64: 1>, scalar_prefetch = 0 : i64, scratch_operands = 0 : i64, tpu.core_type = #tpu.core_type<tc>, window_params = [{transform_indices = @transform_0, window_bounds = array<i64: 128, 48>}, {pipeline_mode = #tpu.pipeline_mode<synchronous>, transform_indices = @transform_1, window_bounds = array<i64: 48, 128>}, {pipeline_mode = #tpu.pipeline_mode<synchronous>, transform_indices = @transform_2, window_bounds = array<i64: 1, 128>}, {pipeline_mode = #tpu.pipeline_mode<synchronous>, transform_indices = @transform_3, window_bounds = array<i64: 1, 128>}, {pipeline_mode = #tpu.pipeline_mode<synchronous>, transform_indices = @transform_4, window_bounds = array<i64: 1, 128>}, {transform_indices = @transform_5, window_bounds = array<i64: 128, 128>}]} {
    %c0 = arith.constant 0 : index
    %c0_0 = arith.constant 0 : index
    %0 = vector.load %arg1[%c0, %c0_0] : memref<128x48xbf16, #tpu.memory_space<vmem>>, vector<128x48xbf16>
    %c0_1 = arith.constant 0 : index
    %c0_2 = arith.constant 0 : index
    %1 = vector.load %arg2[%c0_1, %c0_2] : memref<48x128xbf16, #tpu.memory_space<vmem>>, vector<48x128xbf16>
    %cst = arith.constant dense<0.000000e+00> : vector<128x128xf32>
    %2 = tpu.matmul %0, %1, %cst {dimension_numbers = #tpu.dot_dimension_numbers<[1], [0], [0], [1], [0, 0, 1, 1], [], []>} : vector<128x48xbf16>, vector<48x128xbf16>, vector<128x128xf32> -> vector<128x128xf32>
    %c0_3 = arith.constant 0 : index
    %c0_4 = arith.constant 0 : index
    %3 = vector.load %arg3[%c0_3, %c0_4] : memref<1x128xf32, #tpu.memory_space<vmem>>, vector<1x128xf32>
    %4 = vector.broadcast %3 : vector<1x128xf32> to vector<128x128xf32>
    %5 = arith.addf %2, %4 : vector<128x128xf32>
    %cst_5 = arith.constant 0.000000e+00 : f32
    %6 = vector.broadcast %cst_5 : f32 to vector<128x128xf32>
    %7 = arith.cmpf ogt, %5, %6 : vector<128x128xf32>
    %cst_6 = arith.constant 2.000000e-01 : f32
    %8 = vector.broadcast %cst_6 : f32 to vector<128x128xf32>
    %9 = arith.mulf %8, %5 : vector<128x128xf32>
    %10 = arith.select %7, %5, %9 : vector<128x128xi1>, vector<128x128xf32>
    %c0_7 = arith.constant 0 : index
    %c0_8 = arith.constant 0 : index
    %11 = vector.load %arg4[%c0_7, %c0_8] : memref<1x128xf32, #tpu.memory_space<vmem>>, vector<1x128xf32>
    %12 = vector.broadcast %11 : vector<1x128xf32> to vector<128x128xf32>
    %13 = arith.mulf %10, %12 : vector<128x128xf32>
    %c0_9 = arith.constant 0 : index
    %c0_10 = arith.constant 0 : index
    %14 = vector.load %arg5[%c0_9, %c0_10] : memref<1x128xf32, #tpu.memory_space<vmem>>, vector<1x128xf32>
    %15 = vector.broadcast %14 : vector<1x128xf32> to vector<128x128xf32>
    %16 = arith.addf %13, %15 : vector<128x128xf32>
    %c0_11 = arith.constant 0 : index
    %c0_12 = arith.constant 0 : index
    %17 = vector.load %arg6[%c0_11, %c0_12] : memref<128x128xf32, #tpu.memory_space<vmem>>, vector<128x128xf32>
    tpu.vector_store %arg6[%c0_11, %c0_12], %16 {strides = array<i32>} : memref<128x128xf32, #tpu.memory_space<vmem>>, vector<128x128xf32>,
    return
  }
  func.func @transform_0(%arg0: i32) -> (i32, i32) {
    %c0_i32 = arith.constant 0 : i32
    %c0_i32_0 = arith.constant 0 : i32
    return %arg0, %c0_i32 : i32, i32
  }
  func.func @transform_1(%arg0: i32) -> (i32, i32) {
    %c0_i32 = arith.constant 0 : i32
    %c0_i32_0 = arith.constant 0 : i32
    %c0_i32_1 = arith.constant 0 : i32
    return %c0_i32, %c0_i32_0 : i32, i32
  }
  func.func @transform_2(%arg0: i32) -> (i32, i32) {
    %c0_i32 = arith.constant 0 : i32
    %c0_i32_0 = arith.constant 0 : i32
    %c0_i32_1 = arith.constant 0 : i32
    return %c0_i32, %c0_i32_0 : i32, i32
  }
  func.func @transform_3(%arg0: i32) -> (i32, i32) {
    %c0_i32 = arith.constant 0 : i32
    %c0_i32_0 = arith.constant 0 : i32
    %c0_i32_1 = arith.constant 0 : i32
    return %c0_i32, %c0_i32_0 : i32, i32
  }
  func.func @transform_4(%arg0: i32) -> (i32, i32) {
    %c0_i32 = arith.constant 0 : i32
    %c0_i32_0 = arith.constant 0 : i32
    %c0_i32_1 = arith.constant 0 : i32
    return %c0_i32, %c0_i32_0 : i32, i32
  }
  func.func @transform_5(%arg0: i32) -> (i32, i32) {
    %c0_i32 = arith.constant 0 : i32
    %c0_i32_0 = arith.constant 0 : i32
    return %arg0, %c0_i32 : i32, i32
  }
}

module attributes {stable_mosaic.version = 11 : i64} {
  func.func @_conv_fused_kernel(%arg0: i32, %arg1: memref<32x144xbf16, #tpu.memory_space<vmem>>, %arg2: memref<144x128xbf16, #tpu.memory_space<vmem>>, %arg3: memref<1x128xf32, #tpu.memory_space<vmem>>, %arg4: memref<1x128xf32, #tpu.memory_space<vmem>>, %arg5: memref<1x128xf32, #tpu.memory_space<vmem>>, %arg6: memref<32x128xf32, #tpu.memory_space<vmem>>) attributes {dimension_semantics = [#tpu.dimension_semantics<parallel>], iteration_bounds = array<i64: 1>, scalar_prefetch = 0 : i64, scratch_operands = 0 : i64, tpu.core_type = #tpu.core_type<tc>, window_params = [{transform_indices = @transform_0, window_bounds = array<i64: 32, 144>}, {pipeline_mode = #tpu.pipeline_mode<synchronous>, transform_indices = @transform_1, window_bounds = array<i64: 144, 128>}, {pipeline_mode = #tpu.pipeline_mode<synchronous>, transform_indices = @transform_2, window_bounds = array<i64: 1, 128>}, {pipeline_mode = #tpu.pipeline_mode<synchronous>, transform_indices = @transform_3, window_bounds = array<i64: 1, 128>}, {pipeline_mode = #tpu.pipeline_mode<synchronous>, transform_indices = @transform_4, window_bounds = array<i64: 1, 128>}, {transform_indices = @transform_5, window_bounds = array<i64: 32, 128>}]} {
    %c0 = arith.constant 0 : index
    %c0_0 = arith.constant 0 : index
    %0 = vector.load %arg1[%c0, %c0_0] : memref<32x144xbf16, #tpu.memory_space<vmem>>, vector<32x144xbf16>
    %c0_1 = arith.constant 0 : index
    %c0_2 = arith.constant 0 : index
    %1 = vector.load %arg2[%c0_1, %c0_2] : memref<144x128xbf16, #tpu.memory_space<vmem>>, vector<144x128xbf16>
    %cst = arith.constant dense<0.000000e+00> : vector<32x128xf32>
    %2 = tpu.matmul %0, %1, %cst {dimension_numbers = #tpu.dot_dimension_numbers<[1], [0], [0], [1], [0, 0, 1, 1], [], []>} : vector<32x144xbf16>, vector<144x128xbf16>, vector<32x128xf32> -> vector<32x128xf32>
    %c0_3 = arith.constant 0 : index
    %c0_4 = arith.constant 0 : index
    %3 = vector.load %arg3[%c0_3, %c0_4] : memref<1x128xf32, #tpu.memory_space<vmem>>, vector<1x128xf32>
    %4 = vector.broadcast %3 : vector<1x128xf32> to vector<32x128xf32>
    %5 = arith.addf %2, %4 : vector<32x128xf32>
    %cst_5 = arith.constant 0.000000e+00 : f32
    %6 = vector.broadcast %cst_5 : f32 to vector<32x128xf32>
    %7 = arith.cmpf ogt, %5, %6 : vector<32x128xf32>
    %cst_6 = arith.constant 2.000000e-01 : f32
    %8 = vector.broadcast %cst_6 : f32 to vector<32x128xf32>
    %9 = arith.mulf %8, %5 : vector<32x128xf32>
    %10 = arith.select %7, %5, %9 : vector<32x128xi1>, vector<32x128xf32>
    %c0_7 = arith.constant 0 : index
    %c0_8 = arith.constant 0 : index
    %11 = vector.load %arg4[%c0_7, %c0_8] : memref<1x128xf32, #tpu.memory_space<vmem>>, vector<1x128xf32>
    %12 = vector.broadcast %11 : vector<1x128xf32> to vector<32x128xf32>
    %13 = arith.mulf %10, %12 : vector<32x128xf32>
    %c0_9 = arith.constant 0 : index
    %c0_10 = arith.constant 0 : index
    %14 = vector.load %arg5[%c0_9, %c0_10] : memref<1x128xf32, #tpu.memory_space<vmem>>, vector<1x128xf32>
    %15 = vector.broadcast %14 : vector<1x128xf32> to vector<32x128xf32>
    %16 = arith.addf %13, %15 : vector<32x128xf32>
    %c0_11 = arith.constant 0 : index
    %c0_12 = arith.constant 0 : index
    %17 = vector.load %arg6[%c0_11, %c0_12] : memref<32x128xf32, #tpu.memory_space<vmem>>, vector<32x128xf32>
    tpu.vector_store %arg6[%c0_11, %c0_12], %16 {strides = array<i32>} : memref<32x128xf32, #tpu.memory_space<vmem>>, vector<32x128xf32>,
    return
  }
  func.func @transform_0(%arg0: i32) -> (i32, i32) {
    %c0_i32 = arith.constant 0 : i32
    %c0_i32_0 = arith.constant 0 : i32
    return %arg0, %c0_i32 : i32, i32
  }
  func.func @transform_1(%arg0: i32) -> (i32, i32) {
    %c0_i32 = arith.constant 0 : i32
    %c0_i32_0 = arith.constant 0 : i32
    %c0_i32_1 = arith.constant 0 : i32
    return %c0_i32, %c0_i32_0 : i32, i32
  }
  func.func @transform_2(%arg0: i32) -> (i32, i32) {
    %c0_i32 = arith.constant 0 : i32
    %c0_i32_0 = arith.constant 0 : i32
    %c0_i32_1 = arith.constant 0 : i32
    return %c0_i32, %c0_i32_0 : i32, i32
  }
  func.func @transform_3(%arg0: i32) -> (i32, i32) {
    %c0_i32 = arith.constant 0 : i32
    %c0_i32_0 = arith.constant 0 : i32
    %c0_i32_1 = arith.constant 0 : i32
    return %c0_i32, %c0_i32_0 : i32, i32
  }
  func.func @transform_4(%arg0: i32) -> (i32, i32) {
    %c0_i32 = arith.constant 0 : i32
    %c0_i32_0 = arith.constant 0 : i32
    %c0_i32_1 = arith.constant 0 : i32
    return %c0_i32, %c0_i32_0 : i32, i32
  }
  func.func @transform_5(%arg0: i32) -> (i32, i32) {
    %c0_i32 = arith.constant 0 : i32
    %c0_i32_0 = arith.constant 0 : i32
    return %arg0, %c0_i32 : i32, i32
  }
}

module attributes {stable_mosaic.version = 11 : i64} {
  func.func @_conv_fused_kernel(%arg0: i32, %arg1: memref<16x288xbf16, #tpu.memory_space<vmem>>, %arg2: memref<288x128xbf16, #tpu.memory_space<vmem>>, %arg3: memref<1x128xf32, #tpu.memory_space<vmem>>, %arg4: memref<1x128xf32, #tpu.memory_space<vmem>>, %arg5: memref<1x128xf32, #tpu.memory_space<vmem>>, %arg6: memref<16x128xf32, #tpu.memory_space<vmem>>) attributes {dimension_semantics = [#tpu.dimension_semantics<parallel>], iteration_bounds = array<i64: 1>, scalar_prefetch = 0 : i64, scratch_operands = 0 : i64, tpu.core_type = #tpu.core_type<tc>, window_params = [{transform_indices = @transform_0, window_bounds = array<i64: 16, 288>}, {pipeline_mode = #tpu.pipeline_mode<synchronous>, transform_indices = @transform_1, window_bounds = array<i64: 288, 128>}, {pipeline_mode = #tpu.pipeline_mode<synchronous>, transform_indices = @transform_2, window_bounds = array<i64: 1, 128>}, {pipeline_mode = #tpu.pipeline_mode<synchronous>, transform_indices = @transform_3, window_bounds = array<i64: 1, 128>}, {pipeline_mode = #tpu.pipeline_mode<synchronous>, transform_indices = @transform_4, window_bounds = array<i64: 1, 128>}, {transform_indices = @transform_5, window_bounds = array<i64: 16, 128>}]} {
    %c0 = arith.constant 0 : index
    %c0_0 = arith.constant 0 : index
    %0 = vector.load %arg1[%c0, %c0_0] : memref<16x288xbf16, #tpu.memory_space<vmem>>, vector<16x288xbf16>
    %c0_1 = arith.constant 0 : index
    %c0_2 = arith.constant 0 : index
    %1 = vector.load %arg2[%c0_1, %c0_2] : memref<288x128xbf16, #tpu.memory_space<vmem>>, vector<288x128xbf16>
    %cst = arith.constant dense<0.000000e+00> : vector<16x128xf32>
    %2 = tpu.matmul %0, %1, %cst {dimension_numbers = #tpu.dot_dimension_numbers<[1], [0], [0], [1], [0, 0, 1, 1], [], []>} : vector<16x288xbf16>, vector<288x128xbf16>, vector<16x128xf32> -> vector<16x128xf32>
    %c0_3 = arith.constant 0 : index
    %c0_4 = arith.constant 0 : index
    %3 = vector.load %arg3[%c0_3, %c0_4] : memref<1x128xf32, #tpu.memory_space<vmem>>, vector<1x128xf32>
    %4 = vector.broadcast %3 : vector<1x128xf32> to vector<16x128xf32>
    %5 = arith.addf %2, %4 : vector<16x128xf32>
    %cst_5 = arith.constant 0.000000e+00 : f32
    %6 = vector.broadcast %cst_5 : f32 to vector<16x128xf32>
    %7 = arith.cmpf ogt, %5, %6 : vector<16x128xf32>
    %cst_6 = arith.constant 2.000000e-01 : f32
    %8 = vector.broadcast %cst_6 : f32 to vector<16x128xf32>
    %9 = arith.mulf %8, %5 : vector<16x128xf32>
    %10 = arith.select %7, %5, %9 : vector<16x128xi1>, vector<16x128xf32>
    %c0_7 = arith.constant 0 : index
    %c0_8 = arith.constant 0 : index
    %11 = vector.load %arg4[%c0_7, %c0_8] : memref<1x128xf32, #tpu.memory_space<vmem>>, vector<1x128xf32>
    %12 = vector.broadcast %11 : vector<1x128xf32> to vector<16x128xf32>
    %13 = arith.mulf %10, %12 : vector<16x128xf32>
    %c0_9 = arith.constant 0 : index
    %c0_10 = arith.constant 0 : index
    %14 = vector.load %arg5[%c0_9, %c0_10] : memref<1x128xf32, #tpu.memory_space<vmem>>, vector<1x128xf32>
    %15 = vector.broadcast %14 : vector<1x128xf32> to vector<16x128xf32>
    %16 = arith.addf %13, %15 : vector<16x128xf32>
    %c0_11 = arith.constant 0 : index
    %c0_12 = arith.constant 0 : index
    %17 = vector.load %arg6[%c0_11, %c0_12] : memref<16x128xf32, #tpu.memory_space<vmem>>, vector<16x128xf32>
    tpu.vector_store %arg6[%c0_11, %c0_12], %16 {strides = array<i32>} : memref<16x128xf32, #tpu.memory_space<vmem>>, vector<16x128xf32>,
    return
  }
  func.func @transform_0(%arg0: i32) -> (i32, i32) {
    %c0_i32 = arith.constant 0 : i32
    %c0_i32_0 = arith.constant 0 : i32
    return %arg0, %c0_i32 : i32, i32
  }
  func.func @transform_1(%arg0: i32) -> (i32, i32) {
    %c0_i32 = arith.constant 0 : i32
    %c0_i32_0 = arith.constant 0 : i32
    %c0_i32_1 = arith.constant 0 : i32
    return %c0_i32, %c0_i32_0 : i32, i32
  }
  func.func @transform_2(%arg0: i32) -> (i32, i32) {
    %c0_i32 = arith.constant 0 : i32
    %c0_i32_0 = arith.constant 0 : i32
    %c0_i32_1 = arith.constant 0 : i32
    return %c0_i32, %c0_i32_0 : i32, i32
  }
  func.func @transform_3(%arg0: i32) -> (i32, i32) {
    %c0_i32 = arith.constant 0 : i32
    %c0_i32_0 = arith.constant 0 : i32
    %c0_i32_1 = arith.constant 0 : i32
    return %c0_i32, %c0_i32_0 : i32, i32
  }
  func.func @transform_4(%arg0: i32) -> (i32, i32) {
    %c0_i32 = arith.constant 0 : i32
    %c0_i32_0 = arith.constant 0 : i32
    %c0_i32_1 = arith.constant 0 : i32
    return %c0_i32, %c0_i32_0 : i32, i32
  }
  func.func @transform_5(%arg0: i32) -> (i32, i32) {
    %c0_i32 = arith.constant 0 : i32
    %c0_i32_0 = arith.constant 0 : i32
    return %arg0, %c0_i32 : i32, i32
  }
}

module attributes {stable_mosaic.version = 11 : i64} {
  func.func @_linear_kernel(%arg0: i32, %arg1: i32, %arg2: memref<16x128xbf16, #tpu.memory_space<vmem>>, %arg3: memref<128x128xbf16, #tpu.memory_space<vmem>>, %arg4: memref<1x128xf32, #tpu.memory_space<vmem>>, %arg5: memref<16x128xf32, #tpu.memory_space<vmem>>, %arg6: memref<16x128xf32, #tpu.memory_space<vmem>>) attributes {dimension_semantics = [#tpu.dimension_semantics<parallel>, #tpu.dimension_semantics<arbitrary>], iteration_bounds = array<i64: 1, 1>, scalar_prefetch = 0 : i64, scratch_operands = 1 : i64, tpu.core_type = #tpu.core_type<tc>, window_params = [{transform_indices = @transform_0, window_bounds = array<i64: 16, 128>}, {transform_indices = @transform_1, window_bounds = array<i64: 128, 128>}, {pipeline_mode = #tpu.pipeline_mode<synchronous>, transform_indices = @transform_2, window_bounds = array<i64: 1, 128>}, {transform_indices = @transform_3, window_bounds = array<i64: 16, 128>}]} {
    %c0_i32 = arith.constant 0 : i32
    %0 = arith.cmpi eq, %arg1, %c0_i32 : i32
    %1 = arith.extui %0 : i1 to i32
    %c0_i32_0 = arith.constant 0 : i32
    %2 = arith.cmpi ne, %1, %c0_i32_0 : i32
    scf.if %2 {
      %cst_10 = arith.constant 0.000000e+00 : f32
      %12 = vector.broadcast %cst_10 : f32 to vector<16x128xf32>
      %c0_11 = arith.constant 0 : index
      %c0_12 = arith.constant 0 : index
      %13 = vector.load %arg6[%c0_11, %c0_12] : memref<16x128xf32, #tpu.memory_space<vmem>>, vector<16x128xf32>
      tpu.vector_store %arg6[%c0_11, %c0_12], %12 {strides = array<i32>} : memref<16x128xf32, #tpu.memory_space<vmem>>, vector<16x128xf32>,
    } else {
    }
    %c0 = arith.constant 0 : index
    %c0_1 = arith.constant 0 : index
    %3 = vector.load %arg6[%c0, %c0_1] : memref<16x128xf32, #tpu.memory_space<vmem>>, vector<16x128xf32>
    %c0_2 = arith.constant 0 : index
    %c0_3 = arith.constant 0 : index
    %4 = vector.load %arg2[%c0_2, %c0_3] : memref<16x128xbf16, #tpu.memory_space<vmem>>, vector<16x128xbf16>
    %c0_4 = arith.constant 0 : index
    %c0_5 = arith.constant 0 : index
    %5 = vector.load %arg3[%c0_4, %c0_5] : memref<128x128xbf16, #tpu.memory_space<vmem>>, vector<128x128xbf16>
    %cst = arith.constant dense<0.000000e+00> : vector<16x128xf32>
    %6 = tpu.matmul %4, %5, %cst {dimension_numbers = #tpu.dot_dimension_numbers<[1], [0], [0], [1], [0, 0, 1, 1], [], []>} : vector<16x128xbf16>, vector<128x128xbf16>, vector<16x128xf32> -> vector<16x128xf32>
    %7 = arith.addf %3, %6 : vector<16x128xf32>
    %c0_6 = arith.constant 0 : index
    %c0_7 = arith.constant 0 : index
    %8 = vector.load %arg6[%c0_6, %c0_7] : memref<16x128xf32, #tpu.memory_space<vmem>>, vector<16x128xf32>
    tpu.vector_store %arg6[%c0_6, %c0_7], %7 {strides = array<i32>} : memref<16x128xf32, #tpu.memory_space<vmem>>, vector<16x128xf32>,
    %c0_i32_8 = arith.constant 0 : i32
    %9 = arith.cmpi eq, %arg1, %c0_i32_8 : i32
    %10 = arith.extui %9 : i1 to i32
    %c0_i32_9 = arith.constant 0 : i32
    %11 = arith.cmpi ne, %10, %c0_i32_9 : i32
    scf.if %11 {
      %c0_10 = arith.constant 0 : index
      %c0_11 = arith.constant 0 : index
      %12 = vector.load %arg6[%c0_10, %c0_11] : memref<16x128xf32, #tpu.memory_space<vmem>>, vector<16x128xf32>
      %c0_12 = arith.constant 0 : index
      %c0_13 = arith.constant 0 : index
      %13 = vector.load %arg4[%c0_12, %c0_13] : memref<1x128xf32, #tpu.memory_space<vmem>>, vector<1x128xf32>
      %14 = vector.broadcast %13 : vector<1x128xf32> to vector<16x128xf32>
      %15 = arith.addf %12, %14 : vector<16x128xf32>
      %c0_14 = arith.constant 0 : index
      %c0_15 = arith.constant 0 : index
      %16 = vector.load %arg5[%c0_14, %c0_15] : memref<16x128xf32, #tpu.memory_space<vmem>>, vector<16x128xf32>
      tpu.vector_store %arg5[%c0_14, %c0_15], %15 {strides = array<i32>} : memref<16x128xf32, #tpu.memory_space<vmem>>, vector<16x128xf32>,
    } else {
    }
    return
  }
  func.func @transform_0(%arg0: i32, %arg1: i32) -> (i32, i32) {
    %c0_i32 = arith.constant 0 : i32
    return %arg0, %arg1 : i32, i32
  }
  func.func @transform_1(%arg0: i32, %arg1: i32) -> (i32, i32) {
    %c0_i32 = arith.constant 0 : i32
    %c0_i32_0 = arith.constant 0 : i32
    return %arg1, %c0_i32 : i32, i32
  }
  func.func @transform_2(%arg0: i32, %arg1: i32) -> (i32, i32) {
    %c0_i32 = arith.constant 0 : i32
    %c0_i32_0 = arith.constant 0 : i32
    %c0_i32_1 = arith.constant 0 : i32
    return %c0_i32, %c0_i32_0 : i32, i32
  }
  func.func @transform_3(%arg0: i32, %arg1: i32) -> (i32, i32) {
    %c0_i32 = arith.constant 0 : i32
    %c0_i32_0 = arith.constant 0 : i32
    return %arg0, %c0_i32 : i32, i32
  }
}

module attributes {stable_mosaic.version = 11 : i64} {
  func.func @_conv_fused_kernel(%arg0: i32, %arg1: memref<16x576xbf16, #tpu.memory_space<vmem>>, %arg2: memref<576x128xbf16, #tpu.memory_space<vmem>>, %arg3: memref<1x128xf32, #tpu.memory_space<vmem>>, %arg4: memref<1x128xf32, #tpu.memory_space<vmem>>, %arg5: memref<1x128xf32, #tpu.memory_space<vmem>>, %arg6: memref<16x128xf32, #tpu.memory_space<vmem>>) attributes {dimension_semantics = [#tpu.dimension_semantics<parallel>], iteration_bounds = array<i64: 1>, scalar_prefetch = 0 : i64, scratch_operands = 0 : i64, tpu.core_type = #tpu.core_type<tc>, window_params = [{transform_indices = @transform_0, window_bounds = array<i64: 16, 576>}, {pipeline_mode = #tpu.pipeline_mode<synchronous>, transform_indices = @transform_1, window_bounds = array<i64: 576, 128>}, {pipeline_mode = #tpu.pipeline_mode<synchronous>, transform_indices = @transform_2, window_bounds = array<i64: 1, 128>}, {pipeline_mode = #tpu.pipeline_mode<synchronous>, transform_indices = @transform_3, window_bounds = array<i64: 1, 128>}, {pipeline_mode = #tpu.pipeline_mode<synchronous>, transform_indices = @transform_4, window_bounds = array<i64: 1, 128>}, {transform_indices = @transform_5, window_bounds = array<i64: 16, 128>}]} {
    %c0 = arith.constant 0 : index
    %c0_0 = arith.constant 0 : index
    %0 = vector.load %arg1[%c0, %c0_0] : memref<16x576xbf16, #tpu.memory_space<vmem>>, vector<16x576xbf16>
    %c0_1 = arith.constant 0 : index
    %c0_2 = arith.constant 0 : index
    %1 = vector.load %arg2[%c0_1, %c0_2] : memref<576x128xbf16, #tpu.memory_space<vmem>>, vector<576x128xbf16>
    %cst = arith.constant dense<0.000000e+00> : vector<16x128xf32>
    %2 = tpu.matmul %0, %1, %cst {dimension_numbers = #tpu.dot_dimension_numbers<[1], [0], [0], [1], [0, 0, 1, 1], [], []>} : vector<16x576xbf16>, vector<576x128xbf16>, vector<16x128xf32> -> vector<16x128xf32>
    %c0_3 = arith.constant 0 : index
    %c0_4 = arith.constant 0 : index
    %3 = vector.load %arg3[%c0_3, %c0_4] : memref<1x128xf32, #tpu.memory_space<vmem>>, vector<1x128xf32>
    %4 = vector.broadcast %3 : vector<1x128xf32> to vector<16x128xf32>
    %5 = arith.addf %2, %4 : vector<16x128xf32>
    %cst_5 = arith.constant 0.000000e+00 : f32
    %6 = vector.broadcast %cst_5 : f32 to vector<16x128xf32>
    %7 = arith.cmpf ogt, %5, %6 : vector<16x128xf32>
    %cst_6 = arith.constant 2.000000e-01 : f32
    %8 = vector.broadcast %cst_6 : f32 to vector<16x128xf32>
    %9 = arith.mulf %8, %5 : vector<16x128xf32>
    %10 = arith.select %7, %5, %9 : vector<16x128xi1>, vector<16x128xf32>
    %c0_7 = arith.constant 0 : index
    %c0_8 = arith.constant 0 : index
    %11 = vector.load %arg4[%c0_7, %c0_8] : memref<1x128xf32, #tpu.memory_space<vmem>>, vector<1x128xf32>
    %12 = vector.broadcast %11 : vector<1x128xf32> to vector<16x128xf32>
    %13 = arith.mulf %10, %12 : vector<16x128xf32>
    %c0_9 = arith.constant 0 : index
    %c0_10 = arith.constant 0 : index
    %14 = vector.load %arg5[%c0_9, %c0_10] : memref<1x128xf32, #tpu.memory_space<vmem>>, vector<1x128xf32>
    %15 = vector.broadcast %14 : vector<1x128xf32> to vector<16x128xf32>
    %16 = arith.addf %13, %15 : vector<16x128xf32>
    %c0_11 = arith.constant 0 : index
    %c0_12 = arith.constant 0 : index
    %17 = vector.load %arg6[%c0_11, %c0_12] : memref<16x128xf32, #tpu.memory_space<vmem>>, vector<16x128xf32>
    tpu.vector_store %arg6[%c0_11, %c0_12], %16 {strides = array<i32>} : memref<16x128xf32, #tpu.memory_space<vmem>>, vector<16x128xf32>,
    return
  }
  func.func @transform_0(%arg0: i32) -> (i32, i32) {
    %c0_i32 = arith.constant 0 : i32
    %c0_i32_0 = arith.constant 0 : i32
    return %arg0, %c0_i32 : i32, i32
  }
  func.func @transform_1(%arg0: i32) -> (i32, i32) {
    %c0_i32 = arith.constant 0 : i32
    %c0_i32_0 = arith.constant 0 : i32
    %c0_i32_1 = arith.constant 0 : i32
    return %c0_i32, %c0_i32_0 : i32, i32
  }
  func.func @transform_2(%arg0: i32) -> (i32, i32) {
    %c0_i32 = arith.constant 0 : i32
    %c0_i32_0 = arith.constant 0 : i32
    %c0_i32_1 = arith.constant 0 : i32
    return %c0_i32, %c0_i32_0 : i32, i32
  }
  func.func @transform_3(%arg0: i32) -> (i32, i32) {
    %c0_i32 = arith.constant 0 : i32
    %c0_i32_0 = arith.constant 0 : i32
    %c0_i32_1 = arith.constant 0 : i32
    return %c0_i32, %c0_i32_0 : i32, i32
  }
  func.func @transform_4(%arg0: i32) -> (i32, i32) {
    %c0_i32 = arith.constant 0 : i32
    %c0_i32_0 = arith.constant 0 : i32
    %c0_i32_1 = arith.constant 0 : i32
    return %c0_i32, %c0_i32_0 : i32, i32
  }
  func.func @transform_5(%arg0: i32) -> (i32, i32) {
    %c0_i32 = arith.constant 0 : i32
    %c0_i32_0 = arith.constant 0 : i32
    return %arg0, %c0_i32 : i32, i32
  }
}

</mosaic_0001>

<bundles_post_ra>
// kernel: _lambda_.5
= control target key start
LH: loop header
LB: loop body
LE: loop exit
PB: predicated region body
PF: predicated region fallthrough
CT: control target
= control target key end

     0   :  { %vm108_vm0 = vcmask 392192   ;;  %s598_s1 = inlined_call_operand.vmem [shape: bf16[48,128], index: 1, kind: input, shape index: {}]   ;;  %s599_s0 = inlined_call_operand.vmem [shape: bf16[128,48], index: 0, kind: input, shape index: {}]   ;;  %s600_s2 = inlined_call_operand.vmem [shape: f32[1,128], index: 2, kind: input, shape index: {}]   ;;  %s601_s3 = inlined_call_operand.vmem [shape: f32[1,128], index: 3, kind: input, shape index: {}]   ;;  %s602_s4 = inlined_call_operand.vmem [shape: f32[1,128], index: 4, kind: input, shape index: {}]   ;;  %s603_s5 = inlined_call_operand.vmem [shape: f32[128,128], index: 5, kind: output, shape index: {}]  }
   0x1   :  { %v405_v0 = vld [vmem:[%s598_s1] sm:$0xff]   ;;  %v406_v1 = vld [vmem:[%s598_s1 + $0x8] sm:$0xff]   ;;  %v407_v2 = vld [vmem:[%s598_s1 + $0x10] sm:$0xff]  }
   0x2   :  { %377 = vmatprep.subr.bf16.mxu0 %v405_v0  ;;  %399 = vmatprep.subr.bf16.mxu1 %v405_v0  ;;  %v408_v3 = vld [vmem:[%s599_s0] sm:$0xff]   ;;  %v410_v5 = vld [vmem:[%s599_s0 + $0x8] sm:$0xff]   ;;  %v412_v7 = vld [vmem:[%s599_s0 + $0x10] sm:$0xff]  }
   0x3   :  { %378 = vmatpush3.bf16.msra.mxu0 %v405_v0  ;;  %402 = vmatpush3.bf16.msra.mxu1 %v405_v0  ;;  %v409_v4 = vld [vmem:[%s599_s0 + $0x20] sm:$0xff]   ;;  %v411_v6 = vld [vmem:[%s599_s0 + $0x28] sm:$0xff]   ;;  %v413_v8 = vld [vmem:[%s599_s0 + $0x30] sm:$0xff]  }
   0x4   :  { %379 = vmatprep.subr.bf16.mxu0 %v406_v1  ;;  %400 = vmatprep.subr.bf16.mxu1 %v406_v1  ;;  %v414_v9 = vld [vmem:[%s599_s0 + $0x18] sm:$0xff]   ;;  %v490_v11 = vld [vmem:[%s600_s2] ss:$0 sm:$0xff] }
   0x5   :  { %383 = vmatprep.mubr.msk.bf16.mxu0 %vm108_vm0, %v408_v3  ;;  %391 = vmatprep.mubr.msk.bf16.mxu1 %vm108_vm0, %v409_v4  ;;  %v415_v10 = vld [vmem:[%s599_s0 + $0x38] sm:$0xff]   ;;  %v497_v18 = vld [vmem:[%s601_s3] ss:$0 sm:$0xff] }
   0x6   :  { %v504_v28 = vld [vmem:[%s602_s4] ss:$0 sm:$0xff] }
   0x7   :  { %380 = vmatpush3.bf16.msra.mxu0 %v406_v1  ;;  %403 = vmatpush3.bf16.msra.mxu1 %v406_v1 }
   0x8   :  { %381 = vmatprep.subr.bf16.mxu0 %v407_v2  ;;  %401 = vmatprep.subr.bf16.mxu1 %v407_v2 }
   0xb   :  { %382 = vmatpush3.bf16.msra.mxu0 %v407_v2  ;;  %404 = vmatpush3.bf16.msra.mxu1 %v407_v2 }
   0xe   :  { %384 = vmatmul.mubr.msk.bf16.vlgmr.msra.gmra.mrb[0].mxu0 %vm108_vm0, %v410_v5  ;;  %392 = vmatmul.mubr.msk.bf16.vlgmr.msra.gmra.mrb[0].mxu1 %vm108_vm0, %v411_v6 }
   0xf   :  { %387 = vmatprep.mubr.msk.bf16.mxu0 %vm108_vm0, %v412_v7  ;;  %395 = vmatprep.mubr.msk.bf16.mxu1 %vm108_vm0, %v413_v8 }
  0x16   :  { %388 = vmatmul.mubr.msk.bf16.gmra.mrb[4].mxu0 %vm108_vm0, %v414_v9  ;;  %396 = vmatmul.mubr.msk.bf16.gmra.mrb[4].mxu1 %vm108_vm0, %v415_v10 }
  0xe1   :  { %v385_v12 = vpop.f32.mrb[0].mxu0  ;;  %v393_v13 = vpop.f32.mrb[0].mxu1 }
  0xe2   :  { %v176_v14 = vadd.f32 %v385_v12, %v490_v11  ;;  %v208_v15 = vadd.f32 %v393_v13, %v490_v11  ;;  %v167_v16 = vpop.f32.mrb[1].mxu0  ;;  %v199_v17 = vpop.f32.mrb[1].mxu1 }
  0xe3   :  { %v168_v19 = vadd.f32 %v490_v11, %v167_v16  ;;  %v200_v20 = vadd.f32 %v490_v11, %v199_v17  ;;  %v386_v21 = vpop.f32.mrb[2].mxu0  ;;  %v394_v22 = vpop.f32.mrb[2].mxu1 }
  0xe4   :  { %vm232_vm1 = vcmp.gt.f32.partialorder %v176_v14, 0.0  ;;  %v248_v23 = vmul.f32 0.2, %v176_v14  ;;  %vm240_vm2 = vcmp.gt.f32.partialorder %v208_v15, 0.0  ;;  %v256_v24 = vmul.f32 0.2, %v208_v15 }
  0xe5   :  { %vm230_vm3 = vcmp.gt.f32.partialorder %v168_v19, 0.0  ;;  %v246_v25 = vmul.f32 0.2, %v168_v19  ;;  %vm238_vm4 = vcmp.gt.f32.partialorder %v200_v20, 0.0  ;;  %v254_v26 = vmul.f32 0.2, %v200_v20 }
  0xe6   :  { %v264_v27 = vsel %vm232_vm1, %v176_v14, %v248_v23  ;;  %v272_v29 = vsel %vm240_vm2, %v208_v15, %v256_v24  ;;  %v179_v30 = vadd.f32 %v386_v21, %v490_v11  ;;  %v211_v31 = vadd.f32 %v394_v22, %v490_v11  ;;  %v170_v32 = vpop.f32.mrb[3].mxu0  ;;  %v202_v33 = vpop.f32.mrb[3].mxu1 }
  0xe7   :  { %v287_v34 = vmul.f32 %v497_v18, %v264_v27  ;;  %v295_v35 = vmul.f32 %v497_v18, %v272_v29  ;;  %v262_v36 = vsel %vm230_vm3, %v168_v19, %v246_v25  ;;  %v270_v37 = vsel %vm238_vm4, %v200_v20, %v254_v26 }
  0xe8   :  { %v285_v38 = vmul.f32 %v497_v18, %v262_v36  ;;  %v293_v39 = vmul.f32 %v497_v18, %v270_v37  ;;  %vm233_vm5 = vcmp.gt.f32.partialorder %v179_v30, 0.0  ;;  %v249_v40 = vmul.f32 0.2, %v179_v30 }
  0xe9   :  { %v310_v41 = vadd.f32 %v504_v28, %v287_v34  ;;  %v318_v42 = vadd.f32 %v504_v28, %v295_v35  ;;  %vm241_vm6 = vcmp.gt.f32.partialorder %v211_v31, 0.0  ;;  %v257_v43 = vmul.f32 0.2, %v211_v31  ;;  %v389_v44 = vpop.f32.mrb[4].mxu0  ;;  %v397_v45 = vpop.f32.mrb[4].mxu1 }
  0xea   :  { %v308_v46 = vadd.f32 %v504_v28, %v285_v38  ;;  %v316_v47 = vadd.f32 %v504_v28, %v293_v39  ;;  %v265_v48 = vsel %vm233_vm5, %v179_v30, %v249_v40  ;;  %v171_v49 = vadd.f32 %v490_v11, %v170_v32  ;;  %v183_v50 = vpop.f32.mrb[5].mxu0  ;;  %v215_v51 = vpop.f32.mrb[5].mxu1 }
  0xeb   :  { %326 = vst [vmem:[%s603_s5 + $0x10] sm:$0xff] %v310_v41  ;;  %334 = vst [vmem:[%s603_s5 + $0x50] sm:$0xff] %v318_v42  ;;  %v288_v52 = vmul.f32 %v497_v18, %v265_v48  ;;  %v273_v53 = vsel %vm241_vm6, %v211_v31, %v257_v43  ;;  %v203_v54 = vadd.f32 %v490_v11, %v202_v33  ;;  %v390_v56 = vpop.f32.mrb[6].mxu0  ;;  %v398_v57 = vpop.f32.mrb[6].mxu1 }
  0xec   :  { %v192_v55 = vadd.f32 %v389_v44, %v490_v11  ;;  %324 = vst [vmem:[%s603_s5] sm:$0xff] %v308_v46  ;;  %332 = vst [vmem:[%s603_s5 + $0x40] sm:$0xff] %v316_v47  ;;  %v296_v58 = vmul.f32 %v497_v18, %v273_v53  ;;  %vm231_vm7 = vcmp.gt.f32.partialorder %v171_v49, 0.0  ;;  %v247_v59 = vmul.f32 0.2, %v171_v49  ;;  %v186_v61 = vpop.f32.mrb[7].mxu0  ;;  %v218_v62 = vpop.f32.mrb[7].mxu1 }
  0xed   :  { %v224_v60 = vadd.f32 %v397_v45, %v490_v11  ;;  %v311_v63 = vadd.f32 %v504_v28, %v288_v52  ;;  %vm239_vm8 = vcmp.gt.f32.partialorder %v203_v54, 0.0  ;;  %v255_v0 = vmul.f32 0.2, %v203_v54 }
  0xee   :  { %vm236_vm9 = vcmp.gt.f32.partialorder %v192_v55, 0.0  ;;  %v319_v1 = vadd.f32 %v504_v28, %v296_v58  ;;  %v263_v2 = vsel %vm231_vm7, %v171_v49, %v247_v59  ;;  %v252_v3 = vmul.f32 0.2, %v192_v55 }
  0xef   :  { %vm244_vm10 = vcmp.gt.f32.partialorder %v224_v60, 0.0  ;;  %327 = vst [vmem:[%s603_s5 + $0x18] sm:$0xff] %v311_v63  ;;  %v286_v4 = vmul.f32 %v497_v18, %v263_v2  ;;  %v271_v5 = vsel %vm239_vm8, %v203_v54, %v255_v0  ;;  %v260_v6 = vmul.f32 0.2, %v224_v60 }
  0xf0   :  { %v184_v7 = vadd.f32 %v490_v11, %v183_v50  ;;  %335 = vst [vmem:[%s603_s5 + $0x58] sm:$0xff] %v319_v1  ;;  %v294_v8 = vmul.f32 %v497_v18, %v271_v5  ;;  %v268_v9 = vsel %vm236_vm9, %v192_v55, %v252_v3  ;;  %v216_v10 = vadd.f32 %v490_v11, %v215_v51 }
  0xf1   :  { %v195_v12 = vadd.f32 %v390_v56, %v490_v11  ;;  %v309_v13 = vadd.f32 %v504_v28, %v286_v4  ;;  %v291_v14 = vmul.f32 %v497_v18, %v268_v9  ;;  %v276_v15 = vsel %vm244_vm10, %v224_v60, %v260_v6 }
  0xf2   :  { %vm234_vm11 = vcmp.gt.f32.partialorder %v184_v7, 0.0  ;;  %v317_v16 = vadd.f32 %v504_v28, %v294_v8  ;;  %v299_v17 = vmul.f32 %v497_v18, %v276_v15  ;;  %v250_v19 = vmul.f32 0.2, %v184_v7 }
  0xf3   :  { %vm242_vm12 = vcmp.gt.f32.partialorder %v216_v10, 0.0  ;;  %325 = vst [vmem:[%s603_s5 + $0x8] sm:$0xff] %v309_v13  ;;  %v314_v20 = vadd.f32 %v504_v28, %v291_v14  ;;  %v258_v21 = vmul.f32 0.2, %v216_v10  ;;  %vm237_vm13 = vcmp.gt.f32.partialorder %v195_v12, 0.0 }
  0xf4   :  { %v253_v22 = vmul.f32 0.2, %v195_v12  ;;  %333 = vst [vmem:[%s603_s5 + $0x48] sm:$0xff] %v317_v16  ;;  %v322_v23 = vadd.f32 %v504_v28, %v299_v17  ;;  %v266_v24 = vsel %vm234_vm11, %v184_v7, %v250_v19  ;;  %v227_v25 = vadd.f32 %v398_v57, %v490_v11 }
  0xf5   :  { %v187_v26 = vadd.f32 %v490_v11, %v186_v61  ;;  %330 = vst [vmem:[%s603_s5 + $0x30] sm:$0xff] %v314_v20  ;;  %v289_v27 = vmul.f32 %v497_v18, %v266_v24  ;;  %v274_v29 = vsel %vm242_vm12, %v216_v10, %v258_v21  ;;  %v219_v31 = vadd.f32 %v490_v11, %v218_v62 }
  0xf6   :  { %v269_v30 = vsel %vm237_vm13, %v195_v12, %v253_v22  ;;  %338 = vst [vmem:[%s603_s5 + $0x70] sm:$0xff] %v322_v23  ;;  %v297_v32 = vmul.f32 %v497_v18, %v274_v29  ;;  %vm245_vm14 = vcmp.gt.f32.partialorder %v227_v25, 0.0  ;;  %v261_v34 = vmul.f32 0.2, %v227_v25 }
  0xf7   :  { %v292_v33 = vmul.f32 %v497_v18, %v269_v30  ;;  %v312_v35 = vadd.f32 %v504_v28, %v289_v27  ;;  %vm235_vm15 = vcmp.gt.f32.partialorder %v187_v26, 0.0  ;;  %v251_v36 = vmul.f32 0.2, %v187_v26 }
  0xf8   :  { %vm243_vm0 = vcmp.gt.f32.partialorder %v219_v31, 0.0  ;;  %v320_v37 = vadd.f32 %v504_v28, %v297_v32  ;;  %v277_v11 = vsel %vm245_vm14, %v227_v25, %v261_v34  ;;  %v259_v39 = vmul.f32 0.2, %v219_v31 }
  0xf9   :  { %v315_v38 = vadd.f32 %v504_v28, %v292_v33  ;;  %328 = vst [vmem:[%s603_s5 + $0x20] sm:$0xff] %v312_v35  ;;  %v300_v40 = vmul.f32 %v497_v18, %v277_v11  ;;  %v267_v41 = vsel %vm235_vm15, %v187_v26, %v251_v36 }
  0xfa   :  { %336 = vst [vmem:[%s603_s5 + $0x60] sm:$0xff] %v320_v37  ;;  %v290_v42 = vmul.f32 %v497_v18, %v267_v41  ;;  %v275_v43 = vsel %vm243_vm0, %v219_v31, %v259_v39 }
  0xfb   :  { %331 = vst [vmem:[%s603_s5 + $0x38] sm:$0xff] %v315_v38  ;;  %v323_v44 = vadd.f32 %v504_v28, %v300_v40  ;;  %v298_v45 = vmul.f32 %v497_v18, %v275_v43 }
  0xfc   :  { %v313_v46 = vadd.f32 %v504_v28, %v290_v42 }
  0xfd   :  { %339 = vst [vmem:[%s603_s5 + $0x78] sm:$0xff] %v323_v44  ;;  %v321_v47 = vadd.f32 %v504_v28, %v298_v45 }
  0xfe   :  { %329 = vst [vmem:[%s603_s5 + $0x28] sm:$0xff] %v313_v46 }
  0xff   :  { %337 = vst [vmem:[%s603_s5 + $0x68] sm:$0xff] %v321_v47 }

// kernel: _lambda_.6
= control target key start
LH: loop header
LB: loop body
LE: loop exit
PB: predicated region body
PF: predicated region fallthrough
CT: control target
= control target key end

     0   :  { %v272_v0 = vmov 0   ;;  %vm122_vm0 = vcmask 130048   ;;  %s363_s1 = inlined_call_operand.vmem [shape: bf16[144,128], index: 1, kind: input, shape index: {}]   ;;  %s364_s0 = inlined_call_operand.vmem [shape: bf16[32,144], index: 0, kind: input, shape index: {}]   ;;  %s365_s2 = inlined_call_operand.vmem [shape: f32[1,128], index: 2, kind: input, shape index: {}]   ;;  %s366_s3 = inlined_call_operand.vmem [shape: f32[1,128], index: 3, kind: input, shape index: {}]   ;;  %s367_s4 = inlined_call_operand.vmem [shape: f32[1,128], index: 4, kind: input, shape index: {}]   ;;  %s368_s5 = inlined_call_operand.vmem [shape: f32[32,128], index: 5, kind: output, shape index: {}]  }
   0x1   :  { %129 = vmatprep.subr.bf16.mxu0 %v272_v0  ;;  %238 = vmatprep.subr.bf16.mxu1 %v272_v0  ;;  %v257_v1 = vld [vmem:[%s363_s1] sm:$0xff]   ;;  %v258_v2 = vld [vmem:[%s363_s1 + $0x8] sm:$0xff]   ;;  %v259_v3 = vld [vmem:[%s363_s1 + $0x10] sm:$0xff]  }
   0x2   :  { %130 = vmatpush1.bf16.msra.mxu0 %v257_v1  ;;  %247 = vmatpush1.bf16.msra.mxu1 %v257_v1  ;;  %v260_v4 = vld [vmem:[%s363_s1 + $0x18] sm:$0xff]   ;;  %v268_v5 = vld [vmem:[%s364_s0 + $0x4] ss:$8 sps:$4 sm:$0xff]   ;;  %v263_v9 = vld [vmem:[%s363_s1 + $0x30] sm:$0xff]  }
   0x3   :  { %131 = vmatprep.subr.bf16.mxu0 %v272_v0  ;;  %239 = vmatprep.subr.bf16.mxu1 %v272_v0  ;;  %v271_v6 = vld [vmem:[%s364_s0 + $0x14] ss:$8 sps:$4 sm:$0xff]   ;;  %v261_v7 = vld [vmem:[%s363_s1 + $0x20] sm:$0xff]   ;;  %v262_v8 = vld [vmem:[%s363_s1 + $0x28] sm:$0xff]  }
   0x4   :  { %234 = vmatprep.mubr.msk.bf16.mxu0 %vm122_vm0, %v268_v5  ;;  %235 = vmatprep.mubr.msk.bf16.mxu1 %vm122_vm0, %v271_v6  ;;  %v264_v10 = vld [vmem:[%s363_s1 + $0x38] sm:$0xff]   ;;  %v265_v11 = vld [vmem:[%s363_s1 + $0x40] sm:$0xff]  }
   0x5   :  { %v266_v12 = vld [vmem:[%s364_s0] ss:$8 sps:$4 sm:$0xff]   ;;  %v269_v13 = vld [vmem:[%s364_s0 + $0x10] ss:$8 sps:$4 sm:$0xff]  }
   0x6   :  { %132 = vmatpush1.bf16.msra.mxu0 %v258_v2  ;;  %248 = vmatpush1.bf16.msra.mxu1 %v258_v2  ;;  %v220_v14 = vld [vmem:[%s365_s2] ss:$0 sm:$0xff] }
   0x7   :  { %133 = vmatprep.subr.bf16.mxu0 %v272_v0  ;;  %240 = vmatprep.subr.bf16.mxu1 %v272_v0  ;;  %v236_v21 = vld [vmem:[%s366_s3] ss:$0 sm:$0xff] }
   0x8   :  { %v237_v31 = vld [vmem:[%s367_s4] ss:$0 sm:$0xff] }
   0xa   :  { %134 = vmatpush1.bf16.msra.mxu0 %v259_v3  ;;  %249 = vmatpush1.bf16.msra.mxu1 %v259_v3 }
   0xb   :  { %135 = vmatprep.subr.bf16.mxu0 %v272_v0  ;;  %241 = vmatprep.subr.bf16.mxu1 %v272_v0 }
   0xe   :  { %136 = vmatpush1.bf16.msra.mxu0 %v260_v4  ;;  %250 = vmatpush1.bf16.msra.mxu1 %v260_v4 }
   0xf   :  { %137 = vmatprep.subr.bf16.mxu0 %v272_v0  ;;  %242 = vmatprep.subr.bf16.mxu1 %v272_v0 }
  0x12   :  { %138 = vmatpush1.bf16.msra.mxu0 %v261_v7  ;;  %251 = vmatpush1.bf16.msra.mxu1 %v261_v7 }
  0x13   :  { %139 = vmatprep.subr.bf16.mxu0 %v272_v0  ;;  %243 = vmatprep.subr.bf16.mxu1 %v272_v0 }
  0x16   :  { %140 = vmatpush1.bf16.msra.mxu0 %v262_v8  ;;  %252 = vmatpush1.bf16.msra.mxu1 %v262_v8 }
  0x17   :  { %141 = vmatprep.subr.bf16.mxu0 %v272_v0  ;;  %244 = vmatprep.subr.bf16.mxu1 %v272_v0 }
  0x1a   :  { %142 = vmatpush1.bf16.msra.mxu0 %v263_v9  ;;  %253 = vmatpush1.bf16.msra.mxu1 %v263_v9 }
  0x1b   :  { %143 = vmatprep.subr.bf16.mxu0 %v272_v0  ;;  %245 = vmatprep.subr.bf16.mxu1 %v272_v0 }
  0x1e   :  { %144 = vmatpush1.bf16.msra.mxu0 %v264_v10  ;;  %254 = vmatpush1.bf16.msra.mxu1 %v264_v10 }
  0x1f   :  { %145 = vmatprep.subr.bf16.mxu0 %v272_v0  ;;  %246 = vmatprep.subr.bf16.mxu1 %v272_v0 }
  0x22   :  { %146 = vmatpush1.bf16.msra.mxu0 %v265_v11  ;;  %255 = vmatpush1.bf16.msra.mxu1 %v265_v11 }
  0x25   :  { %162 = vmatmul.mubr.bf16.vlgmr.msra.gmra.mrb[0].mxu0 %v266_v12  ;;  %170 = vmatmul.mubr.bf16.vlgmr.msra.gmra.mrb[0].mxu1 %v269_v13 }
  0xf8   :  { %v163_v15 = vpop.f32.mrb[0].mxu0  ;;  %v171_v16 = vpop.f32.mrb[0].mxu1 }
  0xf9   :  { %v164_v17 = vadd.f32 %v220_v14, %v163_v15  ;;  %v172_v18 = vadd.f32 %v220_v14, %v171_v16  ;;  %v165_v19 = vpop.f32.mrb[1].mxu0  ;;  %v173_v20 = vpop.f32.mrb[1].mxu1 }
  0xfa   :  { %v166_v22 = vpop.f32.mrb[2].mxu0  ;;  %v174_v23 = vpop.f32.mrb[2].mxu1 }
  0xfb   :  { %vm178_vm1 = vcmp.gt.f32.partialorder %v164_v17, 0.0  ;;  %v182_v24 = vmul.f32 0.2, %v164_v17  ;;  %vm180_vm2 = vcmp.gt.f32.partialorder %v172_v18, 0.0  ;;  %v184_v25 = vmul.f32 0.2, %v172_v18 }
  0xfc   :  { %v167_v26 = vadd.f32 %v220_v14, %v166_v22  ;;  %v175_v27 = vadd.f32 %v220_v14, %v174_v23  ;;  %v168_v28 = vpop.f32.mrb[3].mxu0  ;;  %v176_v29 = vpop.f32.mrb[3].mxu1 }
  0xfd   :  { %v186_v30 = vsel %vm178_vm1, %v164_v17, %v182_v24  ;;  %v188_v32 = vsel %vm180_vm2, %v172_v18, %v184_v25 }
  0xfe   :  { %v197_v33 = vmul.f32 %v236_v21, %v186_v30  ;;  %v199_v34 = vmul.f32 %v236_v21, %v188_v32  ;;  %vm179_vm3 = vcmp.gt.f32.partialorder %v167_v26, 0.0  ;;  %v183_v35 = vmul.f32 0.2, %v167_v26 }
  0xff   :  { %vm181_vm4 = vcmp.gt.f32.partialorder %v175_v27, 0.0  ;;  %v185_v36 = vmul.f32 0.2, %v175_v27 }
 0x100   :  { %v208_v37 = vadd.f32 %v237_v31, %v197_v33  ;;  %v210_v38 = vadd.f32 %v237_v31, %v199_v34  ;;  %v187_v39 = vsel %vm179_vm3, %v167_v26, %v183_v35 }
 0x101   :  { %v198_v40 = vmul.f32 %v236_v21, %v187_v39  ;;  %v189_v41 = vsel %vm181_vm4, %v175_v27, %v185_v36 }
 0x102   :  { %212 = vst [vmem:[%s368_s5] sm:$0xff] %v208_v37  ;;  %214 = vst [vmem:[%s368_s5 + $0x10] sm:$0xff] %v210_v38  ;;  %v200_v42 = vmul.f32 %v236_v21, %v189_v41 }
 0x103   :  { %v209_v43 = vadd.f32 %v237_v31, %v198_v40 }
 0x104   :  { %v211_v44 = vadd.f32 %v237_v31, %v200_v42 }
 0x105   :  { %213 = vst [vmem:[%s368_s5 + $0x8] sm:$0xff] %v209_v43 }
 0x106   :  { %215 = vst [vmem:[%s368_s5 + $0x18] sm:$0xff] %v211_v44 }

// kernel: _lambda_.7
= control target key start
LH: loop header
LB: loop body
LE: loop exit
PB: predicated region body
PF: predicated region fallthrough
CT: control target
= control target key end

     0   :  { %v389_v1 = vmov 0.0   ;;  %vm390_vm0 = vmmov 0   ;;  %vm191_vm1 = vcmask 261120   ;;  %s499_s1 = inlined_call_operand.vmem [shape: bf16[288,128], index: 1, kind: input, shape index: {}]   ;;  %s500_s0 = inlined_call_operand.vmem [shape: bf16[16,288], index: 0, kind: input, shape index: {}]   ;;  %s501_s2 = inlined_call_operand.vmem [shape: f32[1,128], index: 2, kind: input, shape index: {}]   ;;  %s502_s3 = inlined_call_operand.vmem [shape: f32[1,128], index: 3, kind: input, shape index: {}]   ;;  %s503_s4 = inlined_call_operand.vmem [shape: f32[1,128], index: 4, kind: input, shape index: {}]   ;;  %s504_s5 = inlined_call_operand.vmem [shape: f32[16,128], index: 5, kind: output, shape index: {}]  }
   0x1   :  { %v367_v0 = vld [vmem:[%s499_s1 + $0x40] sm:$0xff]   ;;  %357 = vmatprep.subr.bf16.mxu1 %v389_v1  ;;  %361 = vmatprep.mubr.msk.bf16.mxu1 %vm390_vm0, %v389_v1  ;;  %v369_v3 = vld [vmem:[%s499_s1 + $0x48] sm:$0xff]   ;;  %v371_v5 = vld [vmem:[%s499_s1 + $0x50] sm:$0xff]  }
   0x2   :  { %v368_v2 = vld [vmem:[%s499_s1] sm:$0xff]   ;;  %332 = vmatprep.subr.bf16.mxu0 %v367_v0  ;;  %v370_v4 = vld [vmem:[%s499_s1 + $0x8] sm:$0xff]   ;;  %v372_v6 = vld [vmem:[%s499_s1 + $0x10] sm:$0xff]  }
   0x3   :  { %333 = vmatpush3.bf16.msra.mxu0 %v368_v2  ;;  %v373_v7 = vld [vmem:[%s499_s1 + $0x58] sm:$0xff]   ;;  %v375_v9 = vld [vmem:[%s499_s1 + $0x60] sm:$0xff]   ;;  %v377_v12 = vld [vmem:[%s499_s1 + $0x68] sm:$0xff]  }
   0x4   :  { %334 = vmatprep.subr.bf16.mxu0 %v369_v3  ;;  %v374_v8 = vld [vmem:[%s499_s1 + $0x18] sm:$0xff]   ;;  %v381_v10 = vld [vmem:[%s499_s1 + $0x80] sm:$0xff]   ;;  %v378_v13 = vld [vmem:[%s499_s1 + $0x28] sm:$0xff]  }
   0x5   :  { %v376_v11 = vld [vmem:[%s499_s1 + $0x20] sm:$0xff]   ;;  %358 = vmatpush3.bf16.msra.mxu1 %v381_v10  ;;  %v387_v15 = vld [vmem:[%s499_s1 + $0x88] sm:$0xff]   ;;  %v379_v16 = vld [vmem:[%s499_s1 + $0x70] sm:$0xff]  }
   0x6   :  { %359 = vmatprep.subr.bf16.mxu1 %v389_v1  ;;  %v386_v14 = vld [vmem:[%s500_s0 + $0x4] ss:$12 sps:$4 sm:$0xff]   ;;  %v388_v17 = vld [vmem:[%s500_s0 + $0x8] ss:$12 sps:$4 sm:$0xff]   ;;  %v382_v19 = vld [vmem:[%s499_s1 + $0x78] sm:$0xff]  }
   0x7   :  { %335 = vmatpush3.bf16.msra.mxu0 %v370_v4  ;;  %227 = vmatprep.mubr.bf16.mxu0 %v386_v14  ;;  %v380_v18 = vld [vmem:[%s499_s1 + $0x30] sm:$0xff]   ;;  %v383_v20 = vld [vmem:[%s499_s1 + $0x38] sm:$0xff]   ;;  %v384_v21 = vld [vmem:[%s500_s0] ss:$12 sps:$4 sm:$0xff]  }
   0x8   :  { %336 = vmatprep.subr.bf16.mxu0 %v371_v5  ;;  %v307_v28 = vld [vmem:[%s501_s2] ss:$0 sm:$0xff] }
   0x9   :  { %360 = vmatpush3.bf16.msra.mxu1 %v387_v15  ;;  %v330_v37 = vld [vmem:[%s502_s3] ss:$0 sm:$0xff] }
   0xa   :  { %v331_v40 = vld [vmem:[%s503_s4] ss:$0 sm:$0xff] }
   0xb   :  { %337 = vmatpush3.bf16.msra.mxu0 %v372_v6 }
   0xc   :  { %338 = vmatprep.subr.bf16.mxu0 %v373_v7  ;;  %362 = vmatmul.mubr.msk.bf16.vlgmr.msra.gmra.mrb[0].mxu1 %vm191_vm1, %v388_v17 }
   0xf   :  { %339 = vmatpush3.bf16.msra.mxu0 %v374_v8 }
  0x10   :  { %340 = vmatprep.subr.bf16.mxu0 %v375_v9 }
  0x13   :  { %341 = vmatpush3.bf16.msra.mxu0 %v376_v11 }
  0x14   :  { %342 = vmatprep.subr.bf16.mxu0 %v377_v12 }
  0x17   :  { %343 = vmatpush3.bf16.msra.mxu0 %v378_v13 }
  0x18   :  { %344 = vmatprep.subr.bf16.mxu0 %v379_v16 }
  0x1b   :  { %345 = vmatpush3.bf16.msra.mxu0 %v380_v18 }
  0x1c   :  { %346 = vmatprep.subr.bf16.mxu0 %v382_v19 }
  0x1f   :  { %347 = vmatpush3.bf16.msra.mxu0 %v383_v20 }
  0x22   :  { %228 = vmatmul.mubr.bf16.vlgmr.msra.gmra.mrb[0].mxu0 %v384_v21 }
  0xdf   :  { %v270_v22 = vpop.f32.mrb[0].mxu1 }
  0xe0   :  { %v363_v23 = vpop.f32.mrb[1].mxu1 }
  0xe1   :  { %v273_v24 = vpop.f32.mrb[2].mxu1 }
  0xe2   :  { %v364_v25 = vpop.f32.mrb[3].mxu1 }
  0xf5   :  { %v348_v26 = vpop.f32.mrb[0].mxu0 }
  0xf6   :  { %v349_v27 = vpop.f32.mrb[1].mxu0 }
  0xf7   :  { %v350_v29 = vadd.f32 %v349_v27, %v348_v26  ;;  %v351_v30 = vpop.f32.mrb[2].mxu0 }
  0xf8   :  { %v352_v31 = vpop.f32.mrb[3].mxu0 }
  0xf9   :  { %v230_v32 = vadd.f32 %v350_v29, %v307_v28  ;;  %v353_v33 = vadd.f32 %v352_v31, %v351_v30 }
  0xfb   :  { %v271_v34 = vadd.f32 %v270_v22, %v230_v32  ;;  %v233_v35 = vadd.f32 %v353_v33, %v307_v28 }
  0xfd   :  { %vm277_vm2 = vcmp.gt.f32.partialorder %v271_v34, 0.0  ;;  %v279_v36 = vmul.f32 0.2, %v271_v34  ;;  %v274_v38 = vadd.f32 %v273_v24, %v233_v35 }
  0xff   :  { %v281_v39 = vsel %vm277_vm2, %v271_v34, %v279_v36  ;;  %vm278_vm3 = vcmp.gt.f32.partialorder %v274_v38, 0.0  ;;  %v280_v41 = vmul.f32 0.2, %v274_v38 }
 0x100   :  { %v290_v42 = vmul.f32 %v330_v37, %v281_v39 }
 0x101   :  { %v282_v43 = vsel %vm278_vm3, %v274_v38, %v280_v41 }
 0x102   :  { %v299_v44 = vadd.f32 %v331_v40, %v290_v42  ;;  %v291_v45 = vmul.f32 %v330_v37, %v282_v43 }
 0x104   :  { %301 = vst [vmem:[%s504_s5] sm:$0xff] %v299_v44  ;;  %v300_v46 = vadd.f32 %v331_v40, %v291_v45 }
 0x106   :  { %302 = vst [vmem:[%s504_s5 + $0x8] sm:$0xff] %v300_v46 }

// kernel: _lambda_.9
= control target key start
LH: loop header
LB: loop body
LE: loop exit
PB: predicated region body
PF: predicated region fallthrough
CT: control target
= control target key end

     0   :  { %v210_v0 = vmov 0.0   ;;  %vm211_vm0 = vmmov 0   ;;  %s268_s1 = inlined_call_operand.vmem [shape: bf16[128,128], index: 1, kind: input, shape index: {}]   ;;  %s269_s0 = inlined_call_operand.vmem [shape: bf16[16,128], index: 0, kind: input, shape index: {}]   ;;  %s270_s2 = inlined_call_operand.vmem [shape: f32[1,128], index: 2, kind: input, shape index: {}]   ;;  %s271_s3 = inlined_call_operand.vmem [shape: f32[16,128], index: 3, kind: output, shape index: {}]  }
   0x1   :  { %179 = vmatprep.subr.bf16.mxu0 %v210_v0  ;;  %v201_v1 = vld [vmem:[%s268_s1] sm:$0xff]   ;;  %195 = vmatprep.mubr.msk.bf16.mxu0 %vm211_vm0, %v210_v0  ;;  %v202_v2 = vld [vmem:[%s268_s1 + $0x8] sm:$0xff]   ;;  %v203_v3 = vld [vmem:[%s268_s1 + $0x10] sm:$0xff]  }
   0x2   :  { %180 = vmatpush3.bf16.msra.mxu0 %v201_v1  ;;  %v204_v4 = vld [vmem:[%s268_s1 + $0x18] sm:$0xff]   ;;  %v205_v5 = vld [vmem:[%s268_s1 + $0x20] sm:$0xff]   ;;  %v206_v6 = vld [vmem:[%s268_s1 + $0x28] sm:$0xff]  }
   0x3   :  { %181 = vmatprep.subr.bf16.mxu0 %v210_v0  ;;  %v207_v7 = vld [vmem:[%s268_s1 + $0x30] sm:$0xff]   ;;  %v208_v8 = vld [vmem:[%s268_s1 + $0x38] sm:$0xff]   ;;  %v209_v9 = vld [vmem:[%s269_s0] sm:$0xff]  }
   0x4   :  { %v169_v10 = vld [vmem:[%s270_s2] ss:$0 sm:$0xff] }
   0x6   :  { %182 = vmatpush3.bf16.msra.mxu0 %v202_v2 }
   0x7   :  { %183 = vmatprep.subr.bf16.mxu0 %v210_v0 }
   0xa   :  { %184 = vmatpush3.bf16.msra.mxu0 %v203_v3 }
   0xb   :  { %185 = vmatprep.subr.bf16.mxu0 %v210_v0 }
   0xe   :  { %186 = vmatpush3.bf16.msra.mxu0 %v204_v4 }
   0xf   :  { %187 = vmatprep.subr.bf16.mxu0 %v210_v0 }
  0x12   :  { %188 = vmatpush3.bf16.msra.mxu0 %v205_v5 }
  0x13   :  { %189 = vmatprep.subr.bf16.mxu0 %v210_v0 }
  0x16   :  { %190 = vmatpush3.bf16.msra.mxu0 %v206_v6 }
  0x17   :  { %191 = vmatprep.subr.bf16.mxu0 %v210_v0 }
  0x1a   :  { %192 = vmatpush3.bf16.msra.mxu0 %v207_v7 }
  0x1b   :  { %193 = vmatprep.subr.bf16.mxu0 %v210_v0 }
  0x1e   :  { %194 = vmatpush3.bf16.msra.mxu0 %v208_v8 }
  0x21   :  { %196 = vmatmul.mubr.bf16.vlgmr.msra.gmra.mrb[0].mxu0 %v209_v9 }
  0xf4   :  { %v129_v11 = vpop.f32.mrb[0].mxu0 }
  0xf5   :  { %v152_v12 = vadd.f32 %v169_v10, %v129_v11  ;;  %v197_v13 = vpop.f32.mrb[1].mxu0 }
  0xf6   :  { %v132_v14 = vpop.f32.mrb[2].mxu0 }
  0xf7   :  { %154 = vst [vmem:[%s271_s3] sm:$0xff] %v152_v12  ;;  %v153_v15 = vadd.f32 %v169_v10, %v132_v14  ;;  %v198_v16 = vpop.f32.mrb[3].mxu0 }
  0xf9   :  { %155 = vst [vmem:[%s271_s3 + $0x8] sm:$0xff] %v153_v15 }

// kernel: _lambda_.8
= control target key start
LH: loop header
LB: loop body
LE: loop exit
PB: predicated region body
PF: predicated region fallthrough
CT: control target
= control target key end

     0   :  { %v655_v33 = vmov 0.0   ;;  %vm656_vm0 = vmmov 0   ;;  %vm347_vm1 = vcmask 523264   ;;  %s825_s1 = inlined_call_operand.vmem [shape: bf16[576,128], index: 1, kind: input, shape index: {}]   ;;  %s826_s0 = inlined_call_operand.vmem [shape: bf16[16,576], index: 0, kind: input, shape index: {}]   ;;  %s827_s2 = inlined_call_operand.vmem [shape: f32[1,128], index: 2, kind: input, shape index: {}]   ;;  %s828_s3 = inlined_call_operand.vmem [shape: f32[1,128], index: 3, kind: input, shape index: {}]   ;;  %s829_s4 = inlined_call_operand.vmem [shape: f32[1,128], index: 4, kind: input, shape index: {}]   ;;  %s830_s5 = inlined_call_operand.vmem [shape: f32[16,128], index: 5, kind: output, shape index: {}]  }
   0x1   :  { %v612_v0 = vld [vmem:[%s825_s1 + $0x40] sm:$0xff]   ;;  %v616_v4 = vld [vmem:[%s825_s1 + $0x48] sm:$0xff]   ;;  %v620_v8 = vld [vmem:[%s825_s1 + $0x50] sm:$0xff]  }
   0x2   :  { %v613_v1 = vld [vmem:[%s825_s1] sm:$0xff]   ;;  %549 = vmatprep.subr.bf16.mxu0 %v612_v0  ;;  %v617_v5 = vld [vmem:[%s825_s1 + $0x8] sm:$0xff]   ;;  %v621_v9 = vld [vmem:[%s825_s1 + $0x10] sm:$0xff]  }
   0x3   :  { %v614_v2 = vld [vmem:[%s825_s1 + $0xc0] sm:$0xff]   ;;  %550 = vmatpush3.bf16.msra.mxu0 %v613_v1  ;;  %v618_v6 = vld [vmem:[%s825_s1 + $0xc8] sm:$0xff]   ;;  %v622_v10 = vld [vmem:[%s825_s1 + $0xd0] sm:$0xff]  }
   0x4   :  { %v615_v3 = vld [vmem:[%s825_s1 + $0x80] sm:$0xff]   ;;  %571 = vmatprep.subr.bf16.mxu1 %v614_v2  ;;  %551 = vmatprep.subr.bf16.mxu0 %v616_v4  ;;  %v619_v7 = vld [vmem:[%s825_s1 + $0x88] sm:$0xff]   ;;  %v623_v11 = vld [vmem:[%s825_s1 + $0x90] sm:$0xff]  }
   0x5   :  { %572 = vmatpush3.bf16.msra.mxu1 %v615_v3  ;;  %v624_v12 = vld [vmem:[%s825_s1 + $0x58] sm:$0xff]   ;;  %v628_v16 = vld [vmem:[%s825_s1 + $0x60] sm:$0xff]   ;;  %v632_v20 = vld [vmem:[%s825_s1 + $0x68] sm:$0xff]  }
   0x6   :  { %573 = vmatprep.subr.bf16.mxu1 %v618_v6  ;;  %v625_v13 = vld [vmem:[%s825_s1 + $0x18] sm:$0xff]   ;;  %v629_v17 = vld [vmem:[%s825_s1 + $0x20] sm:$0xff]   ;;  %v633_v21 = vld [vmem:[%s825_s1 + $0x28] sm:$0xff]  }
   0x7   :  { %552 = vmatpush3.bf16.msra.mxu0 %v617_v5  ;;  %v626_v14 = vld [vmem:[%s825_s1 + $0xd8] sm:$0xff]   ;;  %v630_v18 = vld [vmem:[%s825_s1 + $0xe0] sm:$0xff]   ;;  %v634_v22 = vld [vmem:[%s825_s1 + $0xe8] sm:$0xff]  }
   0x8   :  { %553 = vmatprep.subr.bf16.mxu0 %v620_v8  ;;  %v627_v15 = vld [vmem:[%s825_s1 + $0x98] sm:$0xff]   ;;  %v631_v19 = vld [vmem:[%s825_s1 + $0xa0] sm:$0xff]   ;;  %v635_v23 = vld [vmem:[%s825_s1 + $0xa8] sm:$0xff]  }
   0x9   :  { %574 = vmatpush3.bf16.msra.mxu1 %v619_v7  ;;  %v636_v24 = vld [vmem:[%s825_s1 + $0x70] sm:$0xff]   ;;  %v640_v28 = vld [vmem:[%s825_s1 + $0x78] sm:$0xff]   ;;  %v649_v36 = vld [vmem:[%s826_s0 + $0xc] ss:$20 sps:$4 sm:$0xff]  }
   0xa   :  { %575 = vmatprep.subr.bf16.mxu1 %v622_v10  ;;  %v637_v25 = vld [vmem:[%s825_s1 + $0x30] sm:$0xff]   ;;  %v641_v29 = vld [vmem:[%s825_s1 + $0x38] sm:$0xff]   ;;  %v650_v37 = vld [vmem:[%s825_s1 + $0x100] sm:$0xff]   ;;  %424 = vmatprep.mubr.bf16.mxu1 %v649_v36 }
   0xb   :  { %554 = vmatpush3.bf16.msra.mxu0 %v621_v9  ;;  %v638_v26 = vld [vmem:[%s825_s1 + $0xf0] sm:$0xff]   ;;  %v642_v30 = vld [vmem:[%s825_s1 + $0xf8] sm:$0xff]   ;;  %v651_v38 = vld [vmem:[%s825_s1 + $0x108] sm:$0xff]  }
   0xc   :  { %555 = vmatprep.subr.bf16.mxu0 %v624_v12  ;;  %v639_v27 = vld [vmem:[%s825_s1 + $0xb0] sm:$0xff]   ;;  %v645_v32 = vld [vmem:[%s826_s0 + $0x4] ss:$20 sps:$4 sm:$0xff]   ;;  %v647_v35 = vld [vmem:[%s826_s0 + $0x8] ss:$20 sps:$4 sm:$0xff]  }
   0xd   :  { %576 = vmatpush3.bf16.msra.mxu1 %v623_v11  ;;  %v643_v31 = vld [vmem:[%s826_s0] ss:$20 sps:$4 sm:$0xff]   ;;  %v646_v34 = vld [vmem:[%s825_s1 + $0xb8] sm:$0xff]   ;;  %383 = vmatprep.mubr.bf16.mxu0 %v645_v32  ;;  %v654_v41 = vld [vmem:[%s826_s0 + $0x10] ss:$20 sps:$4 sm:$0xff]  }
   0xe   :  { %577 = vmatprep.subr.bf16.mxu1 %v626_v14  ;;  %v652_v39 = vld [vmem:[%s825_s1 + $0x110] sm:$0xff]   ;;  %v653_v40 = vld [vmem:[%s825_s1 + $0x118] sm:$0xff]   ;;  %v504_v43 = vld [vmem:[%s827_s2] ss:$0 sm:$0xff] }
   0xf   :  { %556 = vmatpush3.bf16.msra.mxu0 %v625_v13  ;;  %v547_v0 = vld [vmem:[%s828_s3] ss:$0 sm:$0xff] }
  0x10   :  { %557 = vmatprep.subr.bf16.mxu0 %v628_v16  ;;  %v548_v4 = vld [vmem:[%s829_s4] ss:$0 sm:$0xff] }
  0x11   :  { %578 = vmatpush3.bf16.msra.mxu1 %v627_v15 }
  0x12   :  { %579 = vmatprep.subr.bf16.mxu1 %v630_v18 }
  0x13   :  { %558 = vmatpush3.bf16.msra.mxu0 %v629_v17 }
  0x14   :  { %559 = vmatprep.subr.bf16.mxu0 %v632_v20 }
  0x15   :  { %580 = vmatpush3.bf16.msra.mxu1 %v631_v19 }
  0x16   :  { %581 = vmatprep.subr.bf16.mxu1 %v634_v22 }
  0x17   :  { %560 = vmatpush3.bf16.msra.mxu0 %v633_v21 }
  0x18   :  { %561 = vmatprep.subr.bf16.mxu0 %v636_v24 }
  0x19   :  { %582 = vmatpush3.bf16.msra.mxu1 %v635_v23 }
  0x1a   :  { %583 = vmatprep.subr.bf16.mxu1 %v638_v26 }
  0x1b   :  { %562 = vmatpush3.bf16.msra.mxu0 %v637_v25 }
  0x1c   :  { %563 = vmatprep.subr.bf16.mxu0 %v640_v28 }
  0x1d   :  { %584 = vmatpush3.bf16.msra.mxu1 %v639_v27 }
  0x1e   :  { %585 = vmatprep.subr.bf16.mxu1 %v642_v30 }
  0x1f   :  { %564 = vmatpush3.bf16.msra.mxu0 %v641_v29 }
  0x20   :  { %598 = vmatprep.subr.bf16.mxu0 %v655_v33 }
  0x21   :  { %586 = vmatpush3.bf16.msra.mxu1 %v646_v34 }
  0x22   :  { %384 = vmatmul.mubr.bf16.vlgmr.msra.gmra.mrb[0].mxu0 %v643_v31 }
  0x23   :  { %606 = vmatprep.mubr.msk.bf16.mxu0 %vm656_vm0, %v655_v33  ;;  %599 = vmatpush3.bf16.msra.mxu0 %v650_v37 }
  0x24   :  { %425 = vmatmul.mubr.bf16.vlgmr.msra.gmra.mrb[0].mxu1 %v647_v35  ;;  %600 = vmatprep.subr.bf16.mxu0 %v655_v33 }
  0x27   :  { %601 = vmatpush3.bf16.msra.mxu0 %v651_v38 }
  0x28   :  { %602 = vmatprep.subr.bf16.mxu0 %v655_v33 }
  0x2b   :  { %603 = vmatpush3.bf16.msra.mxu0 %v652_v39 }
  0x2c   :  { %604 = vmatprep.subr.bf16.mxu0 %v655_v33 }
  0x2f   :  { %605 = vmatpush3.bf16.msra.mxu0 %v653_v40 }
  0x32   :  { %607 = vmatmul.mubr.msk.bf16.vlgmr.msra.gmra.mrb[4].mxu0 %vm347_vm1, %v654_v41 }
  0xf5   :  { %v565_v42 = vpop.f32.mrb[0].mxu0 }
  0xf6   :  { %v566_v44 = vpop.f32.mrb[1].mxu0 }
  0xf7   :  { %v567_v45 = vadd.f32 %v566_v44, %v565_v42  ;;  %v568_v46 = vpop.f32.mrb[2].mxu0  ;;  %v587_v47 = vpop.f32.mrb[0].mxu1 }
  0xf8   :  { %v569_v48 = vpop.f32.mrb[3].mxu0  ;;  %v588_v51 = vpop.f32.mrb[1].mxu1 }
  0xf9   :  { %v386_v49 = vadd.f32 %v567_v45, %v504_v43  ;;  %v570_v50 = vadd.f32 %v569_v48, %v568_v46  ;;  %v589_v52 = vadd.f32 %v588_v51, %v587_v47  ;;  %v590_v53 = vpop.f32.mrb[2].mxu1 }
  0xfa   :  { %v591_v55 = vpop.f32.mrb[3].mxu1 }
  0xfb   :  { %v389_v54 = vadd.f32 %v570_v50, %v504_v43  ;;  %v592_v56 = vadd.f32 %v591_v55, %v590_v53  ;;  %v427_v57 = vadd.f32 %v589_v52, %v386_v49 }
  0xfd   :  { %v430_v58 = vadd.f32 %v592_v56, %v389_v54 }
 0x105   :  { %v467_v59 = vpop.f32.mrb[4].mxu0 }
 0x106   :  { %v468_v60 = vadd.f32 %v467_v59, %v427_v57  ;;  %v608_v61 = vpop.f32.mrb[5].mxu0 }
 0x107   :  { %v470_v62 = vpop.f32.mrb[6].mxu0 }
 0x108   :  { %vm474_vm2 = vcmp.gt.f32.partialorder %v468_v60, 0.0  ;;  %v476_v63 = vmul.f32 0.2, %v468_v60  ;;  %v471_v1 = vadd.f32 %v470_v62, %v430_v58  ;;  %v609_v2 = vpop.f32.mrb[7].mxu0 }
 0x10a   :  { %v478_v3 = vsel %vm474_vm2, %v468_v60, %v476_v63  ;;  %vm475_vm3 = vcmp.gt.f32.partialorder %v471_v1, 0.0  ;;  %v477_v5 = vmul.f32 0.2, %v471_v1 }
 0x10b   :  { %v487_v6 = vmul.f32 %v547_v0, %v478_v3 }
 0x10c   :  { %v479_v7 = vsel %vm475_vm3, %v471_v1, %v477_v5 }
 0x10d   :  { %v496_v8 = vadd.f32 %v548_v4, %v487_v6  ;;  %v488_v9 = vmul.f32 %v547_v0, %v479_v7 }
 0x10f   :  { %498 = vst [vmem:[%s830_s5] sm:$0xff] %v496_v8  ;;  %v497_v10 = vadd.f32 %v548_v4, %v488_v9 }
 0x111   :  { %499 = vst [vmem:[%s830_s5 + $0x8] sm:$0xff] %v497_v10 }

</bundles_post_ra>
